<compile_context>
chip_gen: v7x
topology: tpu7x:2x2x1
jax: 0.10.0
libtpu: 0.0.40
codegen_flags: <defaults>
</compile_context>

<pallas_src>
import functools

import jax
import jax.numpy as jnp
import numpy as np
from jax.experimental import pallas as pl
from jax.experimental.pallas import tpu as pltpu


_BN_EPS = 1e-5


def _fold_bn(gamma, beta, mean, var, eps=_BN_EPS):
    scale = gamma / jnp.sqrt(var + eps)
    bias = beta - mean * scale
    return scale.reshape(1, -1).astype(jnp.float32), bias.reshape(1, -1).astype(jnp.float32)


# ---------------- Kernel 1: 1x1 conv (matmul) + BN + ReLU -------------------
def _conv1x1_bn_relu_kernel(x_ref, w_ref, s_ref, b_ref, o_ref):
    y = jnp.dot(x_ref[...], w_ref[...], preferred_element_type=jnp.float32)
    y = jnp.maximum(y * s_ref[...] + b_ref[...], 0.0)
    o_ref[...] = y.astype(o_ref.dtype)


# --- Kernel 2: 3x3 conv (9 tap matmuls) + BN + ReLU + 1x1 conv + BN + add + ReLU
def _conv3x3_conv1x1_res_kernel(taps_ref, w2_ref, s2_ref, b2_ref,
                                w3_ref, s3_ref, b3_ref, res_ref, o_ref):
    acc = jnp.dot(taps_ref[0], w2_ref[0], preferred_element_type=jnp.float32)
    for t in range(1, 9):
        acc = acc + jnp.dot(taps_ref[t], w2_ref[t],
                            preferred_element_type=jnp.float32)
    y2 = jnp.maximum(acc * s2_ref[...] + b2_ref[...], 0.0)
    y3 = jnp.dot(y2, w3_ref[...], preferred_element_type=jnp.float32)
    y3 = y3 * s3_ref[...] + b3_ref[...] + res_ref[...].astype(jnp.float32)
    o_ref[...] = jnp.maximum(y3, 0.0).astype(o_ref.dtype)


def bottleneck_forward(x_nchw, params, *, dilation=1, block_rows=256):
    """Forward of Bottleneck(inplanes, planes, stride=1, dilation, downsample=None).

    Weights are PyTorch-layout (OIHW); BN params are (gamma, beta, mean, var).
    """
    n, cin, h, w = x_nchw.shape
    d = int(dilation)
    planes = params["w1"].shape[0]
    cout = params["w3"].shape[0]               # planes * 4
    assert cout == cin, "identity residual requires inplanes == planes * 4"

    # ---- layout plumbing (XLA): NCHW -> lane-dense (rows, channels) -------
    x_nhwc = jnp.transpose(x_nchw, (0, 2, 3, 1)).astype(jnp.float32)
    m = n * h * w
    x_rows = x_nhwc.reshape(m, cin)

    # Folded (eval-mode) BN affine params.
    s1, b1 = _fold_bn(*params["bn1"])
    s2, b2 = _fold_bn(*params["bn2"])
    s3, b3 = _fold_bn(*params["bn3"])

    # Torch OIHW -> matmul layouts (channels last / contracted).
    w1 = params["w1"][:, :, 0, 0].T.astype(jnp.float32)                 # (Cin, P)
    w2 = jnp.transpose(params["w2"], (2, 3, 1, 0)).reshape(9, planes, planes)
    w2 = w2.astype(jnp.float32)                                          # (9, P, P)
    w3 = params["w3"][:, :, 0, 0].T.astype(jnp.float32)                 # (P, 4P)

    bm = min(block_rows, m)
    grid = (pl.cdiv(m, bm),)

    # ---- stage 1: conv1 (1x1) + bn1 + relu --------------------------------
    y1_rows = pl.pallas_call(
        _conv1x1_bn_relu_kernel,
        grid_spec=pltpu.PrefetchScalarGridSpec(
            num_scalar_prefetch=0,
            grid=grid,
            in_specs=[
                pl.BlockSpec((bm, cin), lambda i: (i, 0)),
                pl.BlockSpec((cin, planes), lambda i: (0, 0)),
                pl.BlockSpec((1, planes), lambda i: (0, 0)),
                pl.BlockSpec((1, planes), lambda i: (0, 0)),
            ],
            out_specs=pl.BlockSpec((bm, planes), lambda i: (i, 0)),
        ),
        out_shape=jax.ShapeDtypeStruct((m, planes), jnp.float32),
        compiler_params=pltpu.CompilerParams(
            dimension_semantics=("parallel",)),
    )(x_rows, w1, s1, b1)

    # ---- XLA layout plumbing: zero-pad y1 spatially and build the nine
    #      dilated 3x3 taps as contiguous lane-dense row slabs --------------
    y1 = y1_rows.reshape(n, h, w, planes)
    y1p = jnp.pad(y1, ((0, 0), (d, d), (d, d), (0, 0)))
    taps = jnp.stack(
        [y1p[:, ky * d:ky * d + h, kx * d:kx * d + w, :].reshape(m, planes)
         for ky in range(3) for kx in range(3)],
        axis=0)                                                          # (9, M, P)

    # ---- stage 2: conv2 (3x3) + bn2 + relu + conv3 (1x1) + bn3 + add + relu
    out_rows = pl.pallas_call(
        _conv3x3_conv1x1_res_kernel,
        grid_spec=pltpu.PrefetchScalarGridSpec(
            num_scalar_prefetch=0,
            grid=grid,
            in_specs=[
                pl.BlockSpec((9, bm, planes), lambda i: (0, i, 0)),
                pl.BlockSpec((9, planes, planes), lambda i: (0, 0, 0)),
                pl.BlockSpec((1, planes), lambda i: (0, 0)),
                pl.BlockSpec((1, planes), lambda i: (0, 0)),
                pl.BlockSpec((planes, cout), lambda i: (0, 0)),
                pl.BlockSpec((1, cout), lambda i: (0, 0)),
                pl.BlockSpec((1, cout), lambda i: (0, 0)),
                pl.BlockSpec((bm, cout), lambda i: (i, 0)),
            ],
            out_specs=pl.BlockSpec((bm, cout), lambda i: (i, 0)),
        ),
        out_shape=jax.ShapeDtypeStruct((m, cout), jnp.float32),
        compiler_params=pltpu.CompilerParams(
            dimension_semantics=("parallel",)),
    )(taps, w2, s2, b2, w3, s3, b3, x_rows)

    out = out_rows.reshape(n, h, w, cout)
    return jnp.transpose(out, (0, 3, 1, 2))                             # NCHW


# ---------------- pure-JAX reference (PyTorch semantics, eval-mode BN) ------
def _reference(x, params, dilation):
    def bn(y, prm):
        gamma, beta, mean, var = prm
        s = gamma / jnp.sqrt(var + _BN_EPS)
        b = beta - mean * s
        return y * s[None, :, None, None] + b[None, :, None, None]

    dn = ("NCHW", "OIHW", "NCHW")
    d = int(dilation)
    out = jax.lax.conv_general_dilated(x, params["w1"], (1, 1), "VALID",
                                       dimension_numbers=dn)
    out = jax.nn.relu(bn(out, params["bn1"]))
    out = jax.lax.conv_general_dilated(out, params["w2"], (1, 1),
                                       [(d, d), (d, d)],
                                       rhs_dilation=(d, d),
                                       dimension_numbers=dn)
    out = jax.nn.relu(bn(out, params["bn2"]))
    out = jax.lax.conv_general_dilated(out, params["w3"], (1, 1), "VALID",
                                       dimension_numbers=dn)
    out = bn(out, params["bn3"])
    return jax.nn.relu(out + x)


if __name__ == "__main__":
    key = jax.random.PRNGKey(0)
    keys = jax.random.split(key, 8)

    n, planes, h, w = 2, 4, 16, 16
    inplanes = planes * 4            # identity residual path (downsample=None)

    x = jax.random.normal(keys[0], (n, inplanes, h, w), dtype=jnp.float32)

    def bn_params(k, c):
        k1, k2, k3, k4 = jax.random.split(k, 4)
        gamma = jax.random.uniform(k1, (c,), minval=0.5, maxval=1.5)
        beta = jax.random.normal(k2, (c,)) * 0.1
        mean = jax.random.normal(k3, (c,)) * 0.1
        var = jax.random.uniform(k4, (c,), minval=0.5, maxval=1.5)
        return (gamma, beta, mean, var)

    params = {
        "w1": jax.random.normal(keys[1], (planes, inplanes, 1, 1)) * 0.1,
        "bn1": bn_params(keys[2], planes),
        "w2": jax.random.normal(keys[3], (planes, planes, 3, 3)) * 0.1,
        "bn2": bn_params(keys[4], planes),
        "w3": jax.random.normal(keys[5], (planes * 4, planes, 1, 1)) * 0.1,
        "bn3": bn_params(keys[6], planes * 4),
    }

    out = bottleneck_forward(x, params, dilation=1)
    jax.block_until_ready(out)

    ref = _reference(x, params, dilation=1)
    assert out.shape == ref.shape == (n, planes * 4, h, w)
    np.testing.assert_allclose(np.asarray(out), np.asarray(ref),
                               rtol=2e-3, atol=2e-3)

    print("KERNEL_OK")
</pallas_src>

<mosaic_0001>
module attributes {stable_mosaic.version = 11 : i64} {
  func.func @_conv1x1_bn_relu_kernel(%arg0: i32, %arg1: memref<256x16xf32, #tpu.memory_space<vmem>>, %arg2: memref<16x4xf32, #tpu.memory_space<vmem>>, %arg3: memref<1x4xf32, #tpu.memory_space<vmem>>, %arg4: memref<1x4xf32, #tpu.memory_space<vmem>>, %arg5: memref<256x4xf32, #tpu.memory_space<vmem>>) attributes {dimension_semantics = [#tpu.dimension_semantics<parallel>], iteration_bounds = array<i64: 2>, scalar_prefetch = 0 : i64, scratch_operands = 0 : i64, tpu.core_type = #tpu.core_type<tc>, window_params = [{transform_indices = @transform_0, window_bounds = array<i64: 256, 16>}, {pipeline_mode = #tpu.pipeline_mode<synchronous>, transform_indices = @transform_1, window_bounds = array<i64: 16, 4>}, {pipeline_mode = #tpu.pipeline_mode<synchronous>, transform_indices = @transform_2, window_bounds = array<i64: 1, 4>}, {pipeline_mode = #tpu.pipeline_mode<synchronous>, transform_indices = @transform_3, window_bounds = array<i64: 1, 4>}, {transform_indices = @transform_4, window_bounds = array<i64: 256, 4>}]} {
    %c0 = arith.constant 0 : index
    %c0_0 = arith.constant 0 : index
    %0 = vector.load %arg1[%c0, %c0_0] : memref<256x16xf32, #tpu.memory_space<vmem>>, vector<256x16xf32>
    %c0_1 = arith.constant 0 : index
    %c0_2 = arith.constant 0 : index
    %1 = vector.load %arg2[%c0_1, %c0_2] : memref<16x4xf32, #tpu.memory_space<vmem>>, vector<16x4xf32>
    %cst = arith.constant dense<0.000000e+00> : vector<256x4xf32>
    %2 = tpu.matmul %0, %1, %cst {dimension_numbers = #tpu.dot_dimension_numbers<[1], [0], [0], [1], [0, 0, 1, 1], [], []>} : vector<256x16xf32>, vector<16x4xf32>, vector<256x4xf32> -> vector<256x4xf32>
    %c0_3 = arith.constant 0 : index
    %c0_4 = arith.constant 0 : index
    %3 = vector.load %arg3[%c0_3, %c0_4] : memref<1x4xf32, #tpu.memory_space<vmem>>, vector<1x4xf32>
    %4 = vector.broadcast %3 : vector<1x4xf32> to vector<256x4xf32>
    %5 = arith.mulf %2, %4 : vector<256x4xf32>
    %c0_5 = arith.constant 0 : index
    %c0_6 = arith.constant 0 : index
    %6 = vector.load %arg4[%c0_5, %c0_6] : memref<1x4xf32, #tpu.memory_space<vmem>>, vector<1x4xf32>
    %7 = vector.broadcast %6 : vector<1x4xf32> to vector<256x4xf32>
    %8 = arith.addf %5, %7 : vector<256x4xf32>
    %cst_7 = arith.constant 0.000000e+00 : f32
    %9 = vector.broadcast %cst_7 : f32 to vector<256x4xf32>
    %10 = arith.maximumf %8, %9 : vector<256x4xf32>
    %c0_8 = arith.constant 0 : index
    %c0_9 = arith.constant 0 : index
    %11 = vector.load %arg5[%c0_8, %c0_9] : memref<256x4xf32, #tpu.memory_space<vmem>>, vector<256x4xf32>
    tpu.vector_store %arg5[%c0_8, %c0_9], %10 {strides = array<i32>} : memref<256x4xf32, #tpu.memory_space<vmem>>, vector<256x4xf32>,
    return
  }
  func.func @transform_0(%arg0: i32) -> (i32, i32) {
    %c0_i32 = arith.constant 0 : i32
    %c0_i32_0 = arith.constant 0 : i32
    return %arg0, %c0_i32 : i32, i32
  }
  func.func @transform_1(%arg0: i32) -> (i32, i32) {
    %c0_i32 = arith.constant 0 : i32
    %c0_i32_0 = arith.constant 0 : i32
    %c0_i32_1 = arith.constant 0 : i32
    return %c0_i32, %c0_i32_0 : i32, i32
  }
  func.func @transform_2(%arg0: i32) -> (i32, i32) {
    %c0_i32 = arith.constant 0 : i32
    %c0_i32_0 = arith.constant 0 : i32
    %c0_i32_1 = arith.constant 0 : i32
    return %c0_i32, %c0_i32_0 : i32, i32
  }
  func.func @transform_3(%arg0: i32) -> (i32, i32) {
    %c0_i32 = arith.constant 0 : i32
    %c0_i32_0 = arith.constant 0 : i32
    %c0_i32_1 = arith.constant 0 : i32
    return %c0_i32, %c0_i32_0 : i32, i32
  }
  func.func @transform_4(%arg0: i32) -> (i32, i32) {
    %c0_i32 = arith.constant 0 : i32
    %c0_i32_0 = arith.constant 0 : i32
    return %arg0, %c0_i32 : i32, i32
  }
}

</mosaic_0001>

<bundles_post_ra>
// kernel: tpu_custom_call.1
= control target key start
LH: loop header
LB: loop body
LE: loop exit
PB: predicated region body
PF: predicated region fallthrough
CT: control target
= control target key end

     0   :  { %s934_s15 = smov 0   ;;  %s1170_s0 = inlined_call_operand.vmem [shape: f32[512,16], index: 0, kind: input, shape index: {}]   ;;  %s1171_s1 = inlined_call_operand.vmem [shape: f32[16,4], index: 1, kind: input, shape index: {}]   ;;  %s1172_s2 = inlined_call_operand.vmem [shape: f32[1,4], index: 2, kind: input, shape index: {}]   ;;  %s1173_s3 = inlined_call_operand.vmem [shape: f32[1,4], index: 3, kind: input, shape index: {}]   ;;  %s1174_s4 = inlined_call_operand.vmem [shape: f32[512,4], index: 4, kind: output, shape index: {}]  }
   0x1 LB: > { %s756_s16 = sadd.s32 4294967295, %s907_s15   ;;  %p760_p0 = scmp.ge.s32.totalorder %s907_s15, 1  ;;  %s907_s15 = sphi %s934_s15, %s14_s15  }
   0x2   : > { %p163_p1 = scmp.lt.s32.totalorder %s907_s15, 3 }
   0x4   : > { %p164_p2 = pnand %p760_p0, %p163_p1 }
   0x5   : > { %v233_v0 = vld [vmem:[%s1171_s1] sm:$0xff] (!%p164_p2)  ;;  %v234_v1 = vld [vmem:[%s1171_s1 + $0x8] sm:$0xff] (!%p164_p2)  ;;  %s761_s21 = sshll.u32 (!%p164_p2), %s756_s16, 5  ;;  %vm235_vm0 = vcmask (!%p164_p2), 130048   ;;  %vm667_vm1 = vcmask (!%p164_p2), 31744  }
   0x6   : > { %167 = sbr.rel (%p164_p2) target bundleno = 267 (0x10b), region = 36  ;;  %v887_v2 = vpack.c.bf16 (!%p164_p2), %v234_v1, %v233_v0  ;;  %p190_p3 = scmp.lt.s32.totalorder (!%p164_p2), %s761_s21, 63  ;;  %v1025_v35 = vld [vmem:[%s1172_s2] ss:$0 sm:$0xff] (!%p164_p2) }
   0x7   : > { %v1030_v37 = vld [vmem:[%s1173_s3] ss:$0 sm:$0xff] (!%p164_p2) }
   0x8   : > { %888 = vmatprep.subr.bf16.mxu0 (!%p164_p2), %v887_v2  ;;  %891 = vmatprep.subr.bf16.mxu1 (!%p164_p2), %v887_v2 }
   0x9   : > { %890 = vmatpush3.bf16.msra.mxu0 (!%p164_p2), %v887_v2  ;;  %892 = vmatpush3.bf16.msra.mxu1 (!%p164_p2), %v887_v2 }
   0xd   : > { %s1176_s21 = smov (!%p190_p3, %s761_s21), 63 }
   0xe   : > { %s762_s22 = sshll.u32 %s1176_s21, 3 }
   0xf   : > { %s956_s25 = scalar_lea.vmem %s1170_s0, %s762_s22  ;;  %s1043_s6 = scalar_lea.vmem %s1174_s4, %s762_s22 }
  0x10   : > { %v201_v3 = vld [vmem:[%s956_s25] sm:$0xff]  ;;  %v202_v5 = vld [vmem:[%s956_s25 + $0x8] sm:$0xff]  ;;  %v203_v7 = vld [vmem:[%s956_s25 + $0x10] sm:$0xff] }
  0x11   : > { %v217_v4 = vld [vmem:[%s956_s25 + $0x80] sm:$0xff]  ;;  %839 = vmatprep.mubr.msk.f32.mxu0 %vm235_vm0, %v201_v3  ;;  %v218_v6 = vld [vmem:[%s956_s25 + $0x88] sm:$0xff]  ;;  %v219_v8 = vld [vmem:[%s956_s25 + $0x90] sm:$0xff] }
  0x12   : > { %863 = vmatprep.mubr.msk.f32.mxu1 %vm235_vm0, %v217_v4  ;;  %840 = vmatmul.mubr.msk.f32.vlgmr.msra.gmra.mrb[0].mxu0 %vm235_vm0, %v202_v5  ;;  %v204_v9 = vld [vmem:[%s956_s25 + $0x18] sm:$0xff]  ;;  %v205_v11 = vld [vmem:[%s956_s25 + $0x20] sm:$0xff]  ;;  %v206_v13 = vld [vmem:[%s956_s25 + $0x28] sm:$0xff] }
  0x13   : > { %864 = vmatmul.mubr.msk.f32.vlgmr.msra.gmra.mrb[0].mxu1 %vm235_vm0, %v218_v6  ;;  %842 = vmatprep.mubr.msk.f32.mxu0 %vm235_vm0, %v203_v7  ;;  %v220_v10 = vld [vmem:[%s956_s25 + $0x98] sm:$0xff]  ;;  %v221_v12 = vld [vmem:[%s956_s25 + $0xa0] sm:$0xff]  ;;  %v222_v14 = vld [vmem:[%s956_s25 + $0xa8] sm:$0xff] }
  0x14   : > { %866 = vmatprep.mubr.msk.f32.mxu1 %vm235_vm0, %v219_v8  ;;  %v207_v15 = vld [vmem:[%s956_s25 + $0x30] sm:$0xff]  ;;  %v208_v17 = vld [vmem:[%s956_s25 + $0x38] sm:$0xff]  ;;  %v209_v19 = vld [vmem:[%s956_s25 + $0x40] sm:$0xff] }
  0x15   : > { %v223_v16 = vld [vmem:[%s956_s25 + $0xb0] sm:$0xff]  ;;  %v224_v18 = vld [vmem:[%s956_s25 + $0xb8] sm:$0xff]  ;;  %v225_v20 = vld [vmem:[%s956_s25 + $0xc0] sm:$0xff] }
  0x16   : > { %843 = vmatmul.mubr.msk.f32.gmra.mrb[2].mxu0 %vm235_vm0, %v204_v9  ;;  %v210_v21 = vld [vmem:[%s956_s25 + $0x48] sm:$0xff]  ;;  %v211_v23 = vld [vmem:[%s956_s25 + $0x50] sm:$0xff]  ;;  %v212_v25 = vld [vmem:[%s956_s25 + $0x58] sm:$0xff] }
  0x17   : > { %867 = vmatmul.mubr.msk.f32.gmra.mrb[2].mxu1 %vm235_vm0, %v220_v10  ;;  %845 = vmatprep.mubr.msk.f32.mxu0 %vm235_vm0, %v205_v11  ;;  %v226_v22 = vld [vmem:[%s956_s25 + $0xc8] sm:$0xff]  ;;  %v227_v24 = vld [vmem:[%s956_s25 + $0xd0] sm:$0xff]  ;;  %v228_v26 = vld [vmem:[%s956_s25 + $0xd8] sm:$0xff] }
  0x18   : > { %869 = vmatprep.mubr.msk.f32.mxu1 %vm235_vm0, %v221_v12  ;;  %v213_v27 = vld [vmem:[%s956_s25 + $0x60] sm:$0xff]  ;;  %v214_v29 = vld [vmem:[%s956_s25 + $0x68] sm:$0xff]  ;;  %v215_v31 = vld [vmem:[%s956_s25 + $0x70] sm:$0xff] }
  0x19   : > { %v229_v28 = vld [vmem:[%s956_s25 + $0xe0] sm:$0xff]  ;;  %v230_v30 = vld [vmem:[%s956_s25 + $0xe8] sm:$0xff]  ;;  %v231_v32 = vld [vmem:[%s956_s25 + $0xf0] sm:$0xff] }
  0x1a   : > { %846 = vmatmul.mubr.msk.f32.gmra.mrb[4].mxu0 %vm235_vm0, %v206_v13  ;;  %v216_v33 = vld [vmem:[%s956_s25 + $0x78] sm:$0xff] }
  0x1b   : > { %870 = vmatmul.mubr.msk.f32.gmra.mrb[4].mxu1 %vm235_vm0, %v222_v14  ;;  %848 = vmatprep.mubr.msk.f32.mxu0 %vm235_vm0, %v207_v15  ;;  %v232_v34 = vld [vmem:[%s956_s25 + $0xf8] sm:$0xff] }
  0x1c   : > { %872 = vmatprep.mubr.msk.f32.mxu1 %vm235_vm0, %v223_v16 }
  0x1e   : > { %849 = vmatmul.mubr.msk.f32.gmra.mrb[6].mxu0 %vm235_vm0, %v208_v17 }
  0x1f   : > { %873 = vmatmul.mubr.msk.f32.gmra.mrb[6].mxu1 %vm235_vm0, %v224_v18  ;;  %851 = vmatprep.mubr.msk.f32.mxu0 %vm235_vm0, %v209_v19 }
  0x20   : > { %875 = vmatprep.mubr.msk.f32.mxu1 %vm235_vm0, %v225_v20 }
  0x22   : > { %852 = vmatmul.mubr.msk.f32.gmra.mrb[8].mxu0 %vm235_vm0, %v210_v21 }
  0x23   : > { %876 = vmatmul.mubr.msk.f32.gmra.mrb[8].mxu1 %vm235_vm0, %v226_v22  ;;  %854 = vmatprep.mubr.msk.f32.mxu0 %vm235_vm0, %v211_v23 }
  0x24   : > { %878 = vmatprep.mubr.msk.f32.mxu1 %vm235_vm0, %v227_v24 }
  0x26   : > { %855 = vmatmul.mubr.msk.f32.gmra.mrb[10].mxu0 %vm235_vm0, %v212_v25 }
  0x27   : > { %879 = vmatmul.mubr.msk.f32.gmra.mrb[10].mxu1 %vm235_vm0, %v228_v26  ;;  %857 = vmatprep.mubr.msk.f32.mxu0 %vm235_vm0, %v213_v27 }
  0x28   : > { %881 = vmatprep.mubr.msk.f32.mxu1 %vm235_vm0, %v229_v28 }
  0x2a   : > { %858 = vmatmul.mubr.msk.f32.gmra.mrb[12].mxu0 %vm235_vm0, %v214_v29 }
  0x2b   : > { %882 = vmatmul.mubr.msk.f32.gmra.mrb[12].mxu1 %vm235_vm0, %v230_v30  ;;  %860 = vmatprep.mubr.msk.f32.mxu0 %vm235_vm0, %v215_v31 }
  0x2c   : > { %884 = vmatprep.mubr.msk.f32.mxu1 %vm235_vm0, %v231_v32 }
  0x2e   : > { %861 = vmatmul.mubr.msk.f32.gmra.mrb[14].mxu0 %vm235_vm0, %v216_v33 }
  0x2f   : > { %885 = vmatmul.mubr.msk.f32.gmra.mrb[14].mxu1 %vm235_vm0, %v232_v34 }
  0xe5   : > { %v841_v36 = vpop.f32.mrb[0].mxu0 }
  0xe6   : > { %v865_v38 = vpop.f32.mrb[0].mxu1  ;;  %v565_v39 = vmul.f32 %v841_v36, %v1025_v35  ;;  %v398_v41 = vpop.f32.mrb[1].mxu0 }
  0xe7   : > { %v581_v40 = vmul.f32 %v865_v38, %v1025_v35  ;;  %v478_v42 = vpop.f32.mrb[1].mxu1  ;;  %v564_v43 = vmul.f32 %v1025_v35, %v398_v41 }
  0xe8   : > { %v580_v44 = vmul.f32 %v1025_v35, %v478_v42  ;;  %v604_v45 = vadd.f32 %v1030_v37, %v565_v39 }
  0xe9   : > { %v620_v46 = vadd.f32 %v1030_v37, %v581_v40  ;;  %v603_v47 = vadd.f32 %v1030_v37, %v564_v43  ;;  %v844_v49 = vpop.f32.mrb[2].mxu0 }
  0xea   : > { %v619_v48 = vadd.f32 %v1030_v37, %v580_v44  ;;  %v868_v50 = vpop.f32.mrb[2].mxu1  ;;  %v636_v51 = vmax.f32 %v604_v45, 0.0  ;;  %v567_v53 = vmul.f32 %v844_v49, %v1025_v35  ;;  %v408_v55 = vpop.f32.mrb[3].mxu0 }
  0xeb   : > { %v652_v52 = vmax.f32 %v620_v46, 0.0  ;;  %v583_v54 = vmul.f32 %v868_v50, %v1025_v35  ;;  %v488_v56 = vpop.f32.mrb[3].mxu1  ;;  %v635_v57 = vmax.f32 %v603_v47, 0.0  ;;  %v566_v59 = vmul.f32 %v1025_v35, %v408_v55 }
  0xec   : > { %v651_v58 = vmax.f32 %v619_v48, 0.0  ;;  %v582_v60 = vmul.f32 %v1025_v35, %v488_v56  ;;  %669 = vst.msk [vmem:[%s1043_s6 + $0x8] sm:$0xff] %vm667_vm1, %v636_v51  ;;  %v606_v61 = vadd.f32 %v1030_v37, %v567_v53 }
  0xed   : > { %685 = vst.msk [vmem:[%s1043_s6 + $0x88] sm:$0xff] %vm667_vm1, %v652_v52  ;;  %v622_v62 = vadd.f32 %v1030_v37, %v583_v54  ;;  %668 = vst.msk [vmem:[%s1043_s6] sm:$0xff] %vm667_vm1, %v635_v57  ;;  %v605_v63 = vadd.f32 %v1030_v37, %v566_v59  ;;  %v847_v1 = vpop.f32.mrb[4].mxu0 }
  0xee   : > { %684 = vst.msk [vmem:[%s1043_s6 + $0x80] sm:$0xff] %vm667_vm1, %v651_v58  ;;  %v621_v0 = vadd.f32 %v1030_v37, %v582_v60  ;;  %v871_v2 = vpop.f32.mrb[4].mxu1  ;;  %v638_v3 = vmax.f32 %v606_v61, 0.0  ;;  %v569_v5 = vmul.f32 %v847_v1, %v1025_v35  ;;  %v418_v7 = vpop.f32.mrb[5].mxu0 }
  0xef   : > { %v654_v4 = vmax.f32 %v622_v62, 0.0  ;;  %v585_v6 = vmul.f32 %v871_v2, %v1025_v35  ;;  %v498_v8 = vpop.f32.mrb[5].mxu1  ;;  %v637_v9 = vmax.f32 %v605_v63, 0.0  ;;  %v568_v11 = vmul.f32 %v1025_v35, %v418_v7 }
  0xf0   : > { %v653_v10 = vmax.f32 %v621_v0, 0.0  ;;  %v584_v12 = vmul.f32 %v1025_v35, %v498_v8  ;;  %671 = vst.msk [vmem:[%s1043_s6 + $0x18] sm:$0xff] %vm667_vm1, %v638_v3  ;;  %v608_v13 = vadd.f32 %v1030_v37, %v569_v5 }
  0xf1   : > { %687 = vst.msk [vmem:[%s1043_s6 + $0x98] sm:$0xff] %vm667_vm1, %v654_v4  ;;  %v624_v14 = vadd.f32 %v1030_v37, %v585_v6  ;;  %670 = vst.msk [vmem:[%s1043_s6 + $0x10] sm:$0xff] %vm667_vm1, %v637_v9  ;;  %v607_v15 = vadd.f32 %v1030_v37, %v568_v11  ;;  %v850_v17 = vpop.f32.mrb[6].mxu0 }
  0xf2   : > { %686 = vst.msk [vmem:[%s1043_s6 + $0x90] sm:$0xff] %vm667_vm1, %v653_v10  ;;  %v623_v16 = vadd.f32 %v1030_v37, %v584_v12  ;;  %v874_v18 = vpop.f32.mrb[6].mxu1  ;;  %v640_v19 = vmax.f32 %v608_v13, 0.0  ;;  %v571_v21 = vmul.f32 %v850_v17, %v1025_v35  ;;  %v428_v23 = vpop.f32.mrb[7].mxu0 }
  0xf3   : > { %v656_v20 = vmax.f32 %v624_v14, 0.0  ;;  %v587_v22 = vmul.f32 %v874_v18, %v1025_v35  ;;  %v508_v24 = vpop.f32.mrb[7].mxu1  ;;  %v639_v25 = vmax.f32 %v607_v15, 0.0  ;;  %v570_v27 = vmul.f32 %v1025_v35, %v428_v23 }
  0xf4   : > { %v655_v26 = vmax.f32 %v623_v16, 0.0  ;;  %v586_v28 = vmul.f32 %v1025_v35, %v508_v24  ;;  %673 = vst.msk [vmem:[%s1043_s6 + $0x28] sm:$0xff] %vm667_vm1, %v640_v19  ;;  %v610_v29 = vadd.f32 %v1030_v37, %v571_v21 }
  0xf5   : > { %689 = vst.msk [vmem:[%s1043_s6 + $0xa8] sm:$0xff] %vm667_vm1, %v656_v20  ;;  %v626_v30 = vadd.f32 %v1030_v37, %v587_v22  ;;  %672 = vst.msk [vmem:[%s1043_s6 + $0x20] sm:$0xff] %vm667_vm1, %v639_v25  ;;  %v609_v31 = vadd.f32 %v1030_v37, %v570_v27  ;;  %v853_v33 = vpop.f32.mrb[8].mxu0 }
  0xf6   : > { %688 = vst.msk [vmem:[%s1043_s6 + $0xa0] sm:$0xff] %vm667_vm1, %v655_v26  ;;  %v625_v32 = vadd.f32 %v1030_v37, %v586_v28  ;;  %v877_v34 = vpop.f32.mrb[8].mxu1  ;;  %v642_v36 = vmax.f32 %v610_v29, 0.0  ;;  %v573_v39 = vmul.f32 %v853_v33, %v1025_v35  ;;  %v438_v41 = vpop.f32.mrb[9].mxu0 }
  0xf7   : > { %v658_v38 = vmax.f32 %v626_v30, 0.0  ;;  %v589_v40 = vmul.f32 %v877_v34, %v1025_v35  ;;  %v518_v42 = vpop.f32.mrb[9].mxu1  ;;  %v641_v43 = vmax.f32 %v609_v31, 0.0  ;;  %v572_v45 = vmul.f32 %v1025_v35, %v438_v41 }
  0xf8   : > { %v657_v44 = vmax.f32 %v625_v32, 0.0  ;;  %v588_v46 = vmul.f32 %v1025_v35, %v518_v42  ;;  %675 = vst.msk [vmem:[%s1043_s6 + $0x38] sm:$0xff] %vm667_vm1, %v642_v36  ;;  %v612_v47 = vadd.f32 %v1030_v37, %v573_v39 }
  0xf9   : > { %691 = vst.msk [vmem:[%s1043_s6 + $0xb8] sm:$0xff] %vm667_vm1, %v658_v38  ;;  %v628_v48 = vadd.f32 %v1030_v37, %v589_v40  ;;  %674 = vst.msk [vmem:[%s1043_s6 + $0x30] sm:$0xff] %vm667_vm1, %v641_v43  ;;  %v611_v49 = vadd.f32 %v1030_v37, %v572_v45  ;;  %v856_v51 = vpop.f32.mrb[10].mxu0 }
  0xfa   : > { %690 = vst.msk [vmem:[%s1043_s6 + $0xb0] sm:$0xff] %vm667_vm1, %v657_v44  ;;  %v627_v50 = vadd.f32 %v1030_v37, %v588_v46  ;;  %v880_v52 = vpop.f32.mrb[10].mxu1  ;;  %v644_v53 = vmax.f32 %v612_v47, 0.0  ;;  %v575_v55 = vmul.f32 %v856_v51, %v1025_v35  ;;  %v448_v57 = vpop.f32.mrb[11].mxu0 }
  0xfb   : > { %v660_v54 = vmax.f32 %v628_v48, 0.0  ;;  %v591_v56 = vmul.f32 %v880_v52, %v1025_v35  ;;  %v528_v58 = vpop.f32.mrb[11].mxu1  ;;  %v643_v59 = vmax.f32 %v611_v49, 0.0  ;;  %v574_v61 = vmul.f32 %v1025_v35, %v448_v57 }
  0xfc   : > { %v659_v60 = vmax.f32 %v627_v50, 0.0  ;;  %v590_v62 = vmul.f32 %v1025_v35, %v528_v58  ;;  %677 = vst.msk [vmem:[%s1043_s6 + $0x48] sm:$0xff] %vm667_vm1, %v644_v53  ;;  %v614_v63 = vadd.f32 %v1030_v37, %v575_v55 }
  0xfd   : > { %693 = vst.msk [vmem:[%s1043_s6 + $0xc8] sm:$0xff] %vm667_vm1, %v660_v54  ;;  %v630_v0 = vadd.f32 %v1030_v37, %v591_v56  ;;  %676 = vst.msk [vmem:[%s1043_s6 + $0x40] sm:$0xff] %vm667_vm1, %v643_v59  ;;  %v613_v1 = vadd.f32 %v1030_v37, %v574_v61  ;;  %v859_v3 = vpop.f32.mrb[12].mxu0 }
  0xfe   : > { %692 = vst.msk [vmem:[%s1043_s6 + $0xc0] sm:$0xff] %vm667_vm1, %v659_v60  ;;  %v629_v2 = vadd.f32 %v1030_v37, %v590_v62  ;;  %v883_v4 = vpop.f32.mrb[12].mxu1  ;;  %v646_v5 = vmax.f32 %v614_v63, 0.0  ;;  %v577_v7 = vmul.f32 %v859_v3, %v1025_v35  ;;  %v458_v9 = vpop.f32.mrb[13].mxu0 }
  0xff   : > { %v662_v6 = vmax.f32 %v630_v0, 0.0  ;;  %v593_v8 = vmul.f32 %v883_v4, %v1025_v35  ;;  %v538_v10 = vpop.f32.mrb[13].mxu1  ;;  %v645_v11 = vmax.f32 %v613_v1, 0.0  ;;  %v576_v13 = vmul.f32 %v1025_v35, %v458_v9 }
 0x100   : > { %v661_v12 = vmax.f32 %v629_v2, 0.0  ;;  %v592_v14 = vmul.f32 %v1025_v35, %v538_v10  ;;  %679 = vst.msk [vmem:[%s1043_s6 + $0x58] sm:$0xff] %vm667_vm1, %v646_v5  ;;  %v616_v15 = vadd.f32 %v1030_v37, %v577_v7 }
 0x101   : > { %695 = vst.msk [vmem:[%s1043_s6 + $0xd8] sm:$0xff] %vm667_vm1, %v662_v6  ;;  %v632_v16 = vadd.f32 %v1030_v37, %v593_v8  ;;  %678 = vst.msk [vmem:[%s1043_s6 + $0x50] sm:$0xff] %vm667_vm1, %v645_v11  ;;  %v615_v17 = vadd.f32 %v1030_v37, %v576_v13  ;;  %v862_v19 = vpop.f32.mrb[14].mxu0 }
 0x102   : > { %694 = vst.msk [vmem:[%s1043_s6 + $0xd0] sm:$0xff] %vm667_vm1, %v661_v12  ;;  %v631_v18 = vadd.f32 %v1030_v37, %v592_v14  ;;  %v886_v20 = vpop.f32.mrb[14].mxu1  ;;  %v648_v21 = vmax.f32 %v616_v15, 0.0  ;;  %v579_v23 = vmul.f32 %v862_v19, %v1025_v35  ;;  %v468_v25 = vpop.f32.mrb[15].mxu0 }
 0x103   : > { %v664_v22 = vmax.f32 %v632_v16, 0.0  ;;  %v595_v24 = vmul.f32 %v886_v20, %v1025_v35  ;;  %v548_v26 = vpop.f32.mrb[15].mxu1  ;;  %v647_v27 = vmax.f32 %v615_v17, 0.0  ;;  %v578_v29 = vmul.f32 %v1025_v35, %v468_v25 }
 0x104   : > { %v663_v28 = vmax.f32 %v631_v18, 0.0  ;;  %v594_v30 = vmul.f32 %v1025_v35, %v548_v26  ;;  %681 = vst.msk [vmem:[%s1043_s6 + $0x68] sm:$0xff] %vm667_vm1, %v648_v21  ;;  %v618_v31 = vadd.f32 %v1030_v37, %v579_v23 }
 0x105   : > { %697 = vst.msk [vmem:[%s1043_s6 + $0xe8] sm:$0xff] %vm667_vm1, %v664_v22  ;;  %v634_v32 = vadd.f32 %v1030_v37, %v595_v24  ;;  %680 = vst.msk [vmem:[%s1043_s6 + $0x60] sm:$0xff] %vm667_vm1, %v647_v27  ;;  %v617_v33 = vadd.f32 %v1030_v37, %v578_v29 }
 0x106   : > { %696 = vst.msk [vmem:[%s1043_s6 + $0xe0] sm:$0xff] %vm667_vm1, %v663_v28  ;;  %v633_v34 = vadd.f32 %v1030_v37, %v594_v30  ;;  %v650_v36 = vmax.f32 %v618_v31, 0.0 }
 0x107   : > { %v666_v38 = vmax.f32 %v634_v32, 0.0  ;;  %v649_v35 = vmax.f32 %v617_v33, 0.0 }
 0x108   : > { %v665_v39 = vmax.f32 %v633_v34, 0.0  ;;  %683 = vst.msk [vmem:[%s1043_s6 + $0x78] sm:$0xff] %vm667_vm1, %v650_v36 }
 0x109   : > { %699 = vst.msk [vmem:[%s1043_s6 + $0xf8] sm:$0xff] %vm667_vm1, %v666_v38  ;;  %682 = vst.msk [vmem:[%s1043_s6 + $0x70] sm:$0xff] %vm667_vm1, %v649_v35 }
 0x10a   : > { %698 = vst.msk [vmem:[%s1043_s6 + $0xf0] sm:$0xff] %vm667_vm1, %v665_v39 }
 0x10b PF: > { %s14_s15 = sadd.s32 1, %s907_s15  }
 0x10c   : > { %p11_p4 = scmp.ge.s32.totalorder %s14_s15, 4  }
 0x10e   :  { %13 = sbr.rel (!%p11_p4) target bundleno = 1 (0x1), region = 66 }

</bundles_post_ra>
